<compile_context>
chip_gen: v6e
topology: v6e:2x2x1
jax: 0.10.0
libtpu: 0.0.40
codegen_flags: <defaults>
</compile_context>

<pallas_src>
import jax
import jax.numpy as jnp
from jax.experimental import pallas as pl
from jax.experimental.pallas import tpu as pltpu

_LANE = 128


def _round_up(v: int, m: int) -> int:
    return (v + m - 1) // m * m


def _round_down(v: int, m: int) -> int:
    return (v // m) * m


def _cdiv(a: int, b: int) -> int:
    return -(-a // b)


def _vmem_capacity_bytes() -> int:
    """Per-core VMEM capacity; conservative (v7x) fallback if the query fails."""
    try:
        info = pltpu.get_tpu_info()
        cap = getattr(info, "vmem_capacity_bytes", None)
        if cap:
            return int(cap)
    except Exception:
        pass
    return 64 << 20


# --------------------------------------------------------------------------
# Kernels
# --------------------------------------------------------------------------
def _single_step_kernel(x_ref, wt_ref, g_ref, o_ref):
    # x_ref: (tm, D), wt_ref: (D, E*k), g_ref: (E*k, E), o_ref: (tm, E)
    logits = jnp.dot(x_ref[...], wt_ref[...], preferred_element_type=jnp.float32)
    sum_sq = jnp.dot(logits * logits, g_ref[...], preferred_element_type=jnp.float32)
    o_ref[...] = jnp.sqrt(sum_sq).astype(o_ref.dtype)


def _make_multi_step_kernel(tk: int, rem: int):
    """Kernel accumulating partial logits over the D axis (grid axis 1)."""

    def kernel(x_ref, wt_ref, g_ref, o_ref, acc_ref):
        # x_ref: (tm, tk), wt_ref: (tk, E*k), g_ref: (E*k, E),
        # o_ref: (tm, E), acc_ref: (tm, E*k) f32 scratch.
        j = pl.program_id(1)
        nj = pl.num_programs(1)

        @pl.when(j == 0)
        def _init():
            acc_ref[...] = jnp.zeros_like(acc_ref)

        x = x_ref[...]
        if rem:  # static: D not a multiple of tk -> mask tail cols of last tile
            col = jax.lax.broadcasted_iota(jnp.int32, x.shape, 1)
            valid = jnp.where(j == nj - 1, rem, tk)
            x = jnp.where(col < valid, x, jnp.zeros_like(x))

        acc_ref[...] += jnp.dot(x, wt_ref[...], preferred_element_type=jnp.float32)

        @pl.when(j == nj - 1)
        def _finalize():
            logits = acc_ref[...]
            sum_sq = jnp.dot(logits * logits, g_ref[...],
                             preferred_element_type=jnp.float32)
            o_ref[...] = jnp.sqrt(sum_sq).astype(o_ref.dtype)

    return kernel


# --------------------------------------------------------------------------
# Wrapper
# --------------------------------------------------------------------------
def smile_gate_forward(x: jax.Array, weight: jax.Array, num_experts: int, k: int,
                       *, tm: int | None = None, tk: int | None = None) -> jax.Array:
    """Pallas implementation of SmileGate.forward.

    x:      (batch, in_features)
    weight: (num_experts * k, in_features)
    returns (batch, num_experts) in x.dtype
    """
    batch, d = x.shape
    e = num_experts
    ek = num_experts * k
    assert weight.shape == (ek, d), (weight.shape, (ek, d))

    if num_experts == 1:
        return jnp.ones((batch, 1), dtype=x.dtype)

    x_sz = jnp.dtype(x.dtype).itemsize
    w_sz = jnp.dtype(weight.dtype).itemsize
    o_sz = x_sz

    # ---- VMEM budget (per-chip aware, conservative fallback = v7x 64 MiB) ----
    cap = _vmem_capacity_bytes()
    budget = min(int(cap * 0.55), 96 << 20)        # leave room for compiler scratch

    # ---- one-time wrapper prep (tiny arrays) ----
    # Weight transposed once so the kernel dot is the natural (M,K)x(K,N) MXU feed.
    w_t = weight.T                                  # (D, E*k)
    # Group-indicator matrix: G[j, e] = 1 iff j // k == e (built once, constant input).
    g = (jnp.arange(ek, dtype=jnp.int32)[:, None] // k
         == jnp.arange(e, dtype=jnp.int32)[None, :]).astype(jnp.float32)

    # Advisory cost for XLA's scheduler.
    ce = pl.CostEstimate(
        flops=2 * batch * d * ek + 2 * batch * ek * e,
        transcendentals=batch * e,
        bytes_accessed=batch * d * x_sz + ek * d * w_sz + batch * e * o_sz + ek * e * 4,
    )

    # ---- path selection: single reduction step (full D resident) vs. tiled D ----
    force_multi = (tk is not None) and (tk < d)

    # tm-independent and per-row VMEM costs of the single-step layout
    # (double-buffered inputs/outputs; lane dims padded to 128 in VMEM).
    fixed_single = (2 * _round_up(d, 8) * _round_up(ek, _LANE) * w_sz
                    + 2 * _round_up(ek, 8) * _round_up(e, _LANE) * 4)
    per_row_single = 2 * _round_up(d, _LANE) * x_sz + 2 * _round_up(e, _LANE) * o_sz
    tm_max_single = _round_down(max(0, budget - fixed_single) // per_row_single, 8)

    single_step = (not force_multi) and tm_max_single >= 8

    if single_step:
        if tm is None:
            tm_ = min(1024, _round_up(batch, 8), tm_max_single)
            # v7x has two TensorCores sharding the "parallel" batch axis: make
            # sure there are >= 2 batch tiles when the batch is big enough.
            if batch >= 16 and _cdiv(batch, tm_) < 2:
                tm_ = max(8, _round_up(_cdiv(batch, 2), 8))
        else:
            tm_ = max(8, _round_up(tm, 8))

        footprint = fixed_single + tm_ * per_row_single
        vmem_limit = int(min(cap * 0.75, max(32 << 20, footprint + (8 << 20))))

        return pl.pallas_call(
            _single_step_kernel,
            out_shape=jax.ShapeDtypeStruct((batch, e), x.dtype),
            grid=(_cdiv(batch, tm_),),
            in_specs=[
                pl.BlockSpec((tm_, d), lambda i: (i, 0)),      # x tile (full D)
                pl.BlockSpec((d, ek), lambda i: (0, 0)),       # resident weight
                pl.BlockSpec((ek, e), lambda i: (0, 0)),       # constant indicator
            ],
            out_specs=pl.BlockSpec((tm_, e), lambda i: (i, 0)),
            compiler_params=pltpu.CompilerParams(
                dimension_semantics=("parallel",),
                vmem_limit_bytes=vmem_limit,
            ),
            cost_estimate=ce,
        )(x, w_t, g)

    # ---------------- multi-step (tiled D reduction) path ----------------
    if tm is None:
        tm_ = min(256, _round_up(batch, 8))
        if batch >= 16 and _cdiv(batch, tm_) < 2:
            tm_ = max(8, _round_up(_cdiv(batch, 2), 8))
    else:
        tm_ = max(8, _round_up(tm, 8))

    if tk is not None:
        tk_ = max(_LANE, _round_up(min(tk, _round_up(d, _LANE)), _LANE))
    else:
        fixed_multi = (2 * _round_up(ek, 8) * _round_up(e, _LANE) * 4
                       + 2 * tm_ * _round_up(e, _LANE) * o_sz
                       + tm_ * _round_up(ek, _LANE) * 4)
        per_col_multi = 2 * tm_ * x_sz + 2 * _round_up(ek, _LANE) * w_sz
        tk_ = _round_down(max(0, budget - fixed_multi) // per_col_multi, _LANE)
        tk_ = max(_LANE, min(tk_, _round_up(d, _LANE)))

    n_d_tiles = _cdiv(d, tk_)
    d_pad = n_d_tiles * tk_
    rem = d % tk_

    # Only the *weight* (tiny) is zero-padded on the D axis; x is never copied.
    # The x tail columns of the last D tile are masked inside the kernel.
    if d_pad != d:
        w_t = jnp.pad(w_t, ((0, d_pad - d), (0, 0)))

    footprint = (2 * tm_ * tk_ * x_sz
                 + 2 * tk_ * _round_up(ek, _LANE) * w_sz
                 + 2 * _round_up(ek, 8) * _round_up(e, _LANE) * 4
                 + 2 * tm_ * _round_up(e, _LANE) * o_sz
                 + tm_ * _round_up(ek, _LANE) * 4)
    vmem_limit = int(min(cap * 0.75, max(32 << 20, footprint + (8 << 20))))

    kernel = _make_multi_step_kernel(tk_, rem)

    return pl.pallas_call(
        kernel,
        out_shape=jax.ShapeDtypeStruct((batch, e), x.dtype),
        grid=(_cdiv(batch, tm_), n_d_tiles),
        in_specs=[
            pl.BlockSpec((tm_, tk_), lambda i, j: (i, j)),     # x tile
            pl.BlockSpec((tk_, ek), lambda i, j: (j, 0)),      # weight stripe
            pl.BlockSpec((ek, e), lambda i, j: (0, 0)),        # constant indicator
        ],
        out_specs=pl.BlockSpec((tm_, e), lambda i, j: (i, 0)),
        scratch_shapes=[pltpu.VMEM((tm_, ek), jnp.float32)],
        compiler_params=pltpu.CompilerParams(
            dimension_semantics=("parallel", "arbitrary"),
            vmem_limit_bytes=vmem_limit,
        ),
        cost_estimate=ce,
    )(x, w_t, g)


# --------------------------------------------------------------------------
# Reference + tests
# --------------------------------------------------------------------------
def _reference(x, weight, num_experts, k):
    if num_experts == 1:
        return jnp.ones((x.shape[0], 1), dtype=x.dtype)
    logits = jnp.dot(x.astype(jnp.float32), weight.astype(jnp.float32).T)
    logits = logits.reshape(x.shape[0], num_experts, k)
    return jnp.sqrt(jnp.sum(logits * logits, axis=2)).astype(x.dtype)


if __name__ == "__main__":
    num_experts, k = 4, 4

    key = jax.random.PRNGKey(0)
    kx, kw, kx2, kw2, kx3, kw3, kx4, kw4 = jax.random.split(key, 8)

    # Case 1: small shape, single-step path (full-D block, no padding anywhere).
    batch, d = 8, 128
    x = jax.random.normal(kx, (batch, d), dtype=jnp.float32)
    w = jax.random.normal(kw, (num_experts * k, d), dtype=jnp.float32) * 0.02
    out = jax.block_until_ready(smile_gate_forward(x, w, num_experts, k))
    ref = _reference(x, w, num_experts, k)
    assert out.shape == (batch, num_experts), out.shape
    assert jnp.allclose(out, ref, atol=1e-5, rtol=1e-5)

    # Case 2: forced multi-step path with 2 batch tiles and 2 D tiles (grid 2x2).
    batch2, d2 = 16, 256
    x2 = jax.random.normal(kx2, (batch2, d2), dtype=jnp.float32)
    w2 = jax.random.normal(kw2, (num_experts * k, d2), dtype=jnp.float32) * 0.02
    out2 = jax.block_until_ready(
        smile_gate_forward(x2, w2, num_experts, k, tm=8, tk=128))
    ref2 = _reference(x2, w2, num_experts, k)
    assert jnp.allclose(out2, ref2, atol=1e-5, rtol=1e-5)

    # Case 3: ragged in_features, auto path (single-step, full-dim block, no pad).
    batch3, d3 = 8, 200
    x3 = jax.random.normal(kx3, (batch3, d3), dtype=jnp.float32)
    w3 = jax.random.normal(kw3, (num_experts * k, d3), dtype=jnp.float32) * 0.02
    out3 = jax.block_until_ready(smile_gate_forward(x3, w3, num_experts, k))
    ref3 = _reference(x3, w3, num_experts, k)
    assert jnp.allclose(out3, ref3, atol=1e-5, rtol=1e-5)

    # Case 4: ragged in_features, forced multi-step (exercises in-kernel tail mask).
    out4 = jax.block_until_ready(
        smile_gate_forward(x3, w3, num_experts, k, tm=8, tk=128))
    assert jnp.allclose(out4, ref3, atol=1e-5, rtol=1e-5)

    # Case 5: bf16 operands stay bf16 into the kernel (f32 accumulation on MXU).
    batch5, d5 = 16, 128
    x5 = jax.random.normal(kx4, (batch5, d5), dtype=jnp.bfloat16)
    w5 = (jax.random.normal(kw4, (num_experts * k, d5), dtype=jnp.float32)
          * 0.02).astype(jnp.bfloat16)
    out5 = jax.block_until_ready(smile_gate_forward(x5, w5, num_experts, k))
    ref5 = _reference(x5, w5, num_experts, k)
    assert jnp.allclose(out5.astype(jnp.float32), ref5.astype(jnp.float32),
                        atol=2e-2, rtol=5e-2)

    # Case 6: num_experts == 1 shortcut.
    out6 = smile_gate_forward(x, w[:1], 1, 1)
    assert out6.shape == (batch, 1) and bool(jnp.all(out6 == 1.0))

    print("KERNEL_OK")
</pallas_src>

<mosaic_0001>
module attributes {stable_mosaic.version = 11 : i64} {
  func.func @_single_step_kernel(%arg0: i32, %arg1: memref<8x128xf32, #tpu.memory_space<vmem>>, %arg2: memref<128x16xf32, #tpu.memory_space<vmem>>, %arg3: memref<16x4xf32, #tpu.memory_space<vmem>>, %arg4: memref<8x4xf32, #tpu.memory_space<vmem>>) attributes {dimension_semantics = [#tpu.dimension_semantics<parallel>], iteration_bounds = array<i64: 1>, scalar_prefetch = 0 : i64, scratch_operands = 0 : i64, tpu.core_type = #tpu.core_type<tc>, window_params = [{transform_indices = @transform_0, window_bounds = array<i64: 8, 128>}, {pipeline_mode = #tpu.pipeline_mode<synchronous>, transform_indices = @transform_1, window_bounds = array<i64: 128, 16>}, {pipeline_mode = #tpu.pipeline_mode<synchronous>, transform_indices = @transform_2, window_bounds = array<i64: 16, 4>}, {transform_indices = @transform_3, window_bounds = array<i64: 8, 4>}]} {
    %c0 = arith.constant 0 : index
    %c0_0 = arith.constant 0 : index
    %0 = vector.load %arg1[%c0, %c0_0] : memref<8x128xf32, #tpu.memory_space<vmem>>, vector<8x128xf32>
    %c0_1 = arith.constant 0 : index
    %c0_2 = arith.constant 0 : index
    %1 = vector.load %arg2[%c0_1, %c0_2] : memref<128x16xf32, #tpu.memory_space<vmem>>, vector<128x16xf32>
    %cst = arith.constant dense<0.000000e+00> : vector<8x16xf32>
    %2 = tpu.matmul %0, %1, %cst {dimension_numbers = #tpu.dot_dimension_numbers<[1], [0], [0], [1], [0, 0, 1, 1], [], []>} : vector<8x128xf32>, vector<128x16xf32>, vector<8x16xf32> -> vector<8x16xf32>
    %3 = arith.mulf %2, %2 : vector<8x16xf32>
    %c0_3 = arith.constant 0 : index
    %c0_4 = arith.constant 0 : index
    %4 = vector.load %arg3[%c0_3, %c0_4] : memref<16x4xf32, #tpu.memory_space<vmem>>, vector<16x4xf32>
    %cst_5 = arith.constant dense<0.000000e+00> : vector<8x4xf32>
    %5 = tpu.matmul %3, %4, %cst_5 {dimension_numbers = #tpu.dot_dimension_numbers<[1], [0], [0], [1], [0, 0, 1, 1], [], []>} : vector<8x16xf32>, vector<16x4xf32>, vector<8x4xf32> -> vector<8x4xf32>
    %6 = math.sqrt %5 : vector<8x4xf32>
    %c0_6 = arith.constant 0 : index
    %c0_7 = arith.constant 0 : index
    %7 = vector.load %arg4[%c0_6, %c0_7] : memref<8x4xf32, #tpu.memory_space<vmem>>, vector<8x4xf32>
    tpu.vector_store %arg4[%c0_6, %c0_7], %6 {strides = array<i32>} : memref<8x4xf32, #tpu.memory_space<vmem>>, vector<8x4xf32>,
    return
  }
  func.func @transform_0(%arg0: i32) -> (i32, i32) {
    %c0_i32 = arith.constant 0 : i32
    %c0_i32_0 = arith.constant 0 : i32
    return %arg0, %c0_i32 : i32, i32
  }
  func.func @transform_1(%arg0: i32) -> (i32, i32) {
    %c0_i32 = arith.constant 0 : i32
    %c0_i32_0 = arith.constant 0 : i32
    %c0_i32_1 = arith.constant 0 : i32
    return %c0_i32, %c0_i32_0 : i32, i32
  }
  func.func @transform_2(%arg0: i32) -> (i32, i32) {
    %c0_i32 = arith.constant 0 : i32
    %c0_i32_0 = arith.constant 0 : i32
    %c0_i32_1 = arith.constant 0 : i32
    return %c0_i32, %c0_i32_0 : i32, i32
  }
  func.func @transform_3(%arg0: i32) -> (i32, i32) {
    %c0_i32 = arith.constant 0 : i32
    %c0_i32_0 = arith.constant 0 : i32
    return %arg0, %c0_i32 : i32, i32
  }
}

</mosaic_0001>

<bundles_post_ra>
// kernel: tpu_custom_call.1
= control target key start
LH: loop header
LB: loop body
LE: loop exit
PB: predicated region body
PF: predicated region fallthrough
CT: control target
= control target key end

     0   :  { %v258_v0 = vmov 0.0   ;;  %vm259_vm0 = vmmov 0   ;;  %vm104_vm1 = vcmask 130048   ;;  %vm185_vm3 = vcmask 31744   ;;  %s340_s1 = inlined_call_operand.vmem [shape: f32[128,16], index: 1, kind: input, shape index: {}]   ;;  %s341_s0 = inlined_call_operand.vmem [shape: f32[8,128], index: 0, kind: input, shape index: {}]   ;;  %s342_s2 = inlined_call_operand.vmem [shape: f32[16,4], index: 2, kind: input, shape index: {}]   ;;  %s343_s3 = inlined_call_operand.vmem [shape: f32[8,4], index: 3, kind: output, shape index: {}]  }
   0x1   :  { %212 = vmatprep.subr.mxu0 %v258_v0  ;;  %v30_v1 = vld [vmem:[%s340_s1 + $0x78] sm:$0xff]  ;;  %v29_v2 = vld [vmem:[%s340_s1 + $0x70] sm:$0xff]  ;;  %244 = vmatprep.mubr.msk.f32.mxu0 %vm259_vm0, %v258_v0  ;;  %v28_v3 = vld [vmem:[%s340_s1 + $0x68] sm:$0xff] }
   0x2   :  { %213 = vmatpush3.msra.mxu0 %v30_v1  ;;  %247 = vmatprep.subr.mxu1 %v258_v0  ;;  %v27_v4 = vld [vmem:[%s340_s1 + $0x60] sm:$0xff]  ;;  %v26_v5 = vld [vmem:[%s340_s1 + $0x58] sm:$0xff]  ;;  %v25_v6 = vld [vmem:[%s340_s1 + $0x50] sm:$0xff] }
   0x3   :  { %214 = vmatprep.subr.mxu0 %v258_v0  ;;  %251 = vmatprep.mubr.msk.f32.mxu1 %vm259_vm0, %v258_v0  ;;  %v24_v7 = vld [vmem:[%s340_s1 + $0x48] sm:$0xff]  ;;  %v23_v8 = vld [vmem:[%s340_s1 + $0x40] sm:$0xff]  ;;  %v22_v9 = vld [vmem:[%s340_s1 + $0x38] sm:$0xff] }
   0x4   :  { %215 = vmatpush3.msra.mxu0 %v29_v2  ;;  %v21_v10 = vld [vmem:[%s340_s1 + $0x30] sm:$0xff]  ;;  %v20_v11 = vld [vmem:[%s340_s1 + $0x28] sm:$0xff]  ;;  %v19_v12 = vld [vmem:[%s340_s1 + $0x20] sm:$0xff] }
   0x5   :  { %216 = vmatprep.subr.mxu0 %v258_v0  ;;  %v18_v13 = vld [vmem:[%s340_s1 + $0x18] sm:$0xff]  ;;  %v17_v14 = vld [vmem:[%s340_s1 + $0x10] sm:$0xff]  ;;  %v16_v15 = vld [vmem:[%s340_s1 + $0x8] sm:$0xff] }
   0x6   :  { %217 = vmatpush3.msra.mxu0 %v28_v3  ;;  %v15_v16 = vld [vmem:[%s340_s1] sm:$0xff]  ;;  %v103_v18 = vld [vmem:[%s342_s2 + $0x8] sm:$0xff] }
   0x7   :  { %218 = vmatprep.subr.mxu0 %v258_v0  ;;  %v14_v17 = vld [vmem:[%s341_s0] sm:$0xff]  ;;  %248 = vmatpush3.msra.mxu1 %v103_v18 }
   0x8   :  { %219 = vmatpush3.msra.mxu0 %v27_v4  ;;  %249 = vmatprep.subr.mxu1 %v258_v0  ;;  %v102_v19 = vld [vmem:[%s342_s2] sm:$0xff] }
   0x9   :  { %220 = vmatprep.subr.mxu0 %v258_v0  ;;  %250 = vmatpush3.msra.mxu1 %v102_v19 }
   0xa   :  { %221 = vmatpush3.msra.mxu0 %v26_v5 }
   0xb   :  { %222 = vmatprep.subr.mxu0 %v258_v0 }
   0xc   :  { %223 = vmatpush3.msra.mxu0 %v25_v6 }
   0xd   :  { %224 = vmatprep.subr.mxu0 %v258_v0 }
   0xe   :  { %225 = vmatpush3.msra.mxu0 %v24_v7 }
   0xf   :  { %226 = vmatprep.subr.mxu0 %v258_v0 }
  0x10   :  { %227 = vmatpush3.msra.mxu0 %v23_v8 }
  0x11   :  { %228 = vmatprep.subr.mxu0 %v258_v0 }
  0x12   :  { %229 = vmatpush3.msra.mxu0 %v22_v9 }
  0x13   :  { %230 = vmatprep.subr.mxu0 %v258_v0 }
  0x14   :  { %231 = vmatpush3.msra.mxu0 %v21_v10 }
  0x15   :  { %232 = vmatprep.subr.mxu0 %v258_v0 }
  0x16   :  { %233 = vmatpush3.msra.mxu0 %v20_v11 }
  0x17   :  { %234 = vmatprep.subr.mxu0 %v258_v0 }
  0x18   :  { %235 = vmatpush3.msra.mxu0 %v19_v12 }
  0x19   :  { %236 = vmatprep.subr.mxu0 %v258_v0 }
  0x1a   :  { %237 = vmatpush3.msra.mxu0 %v18_v13 }
  0x1b   :  { %238 = vmatprep.subr.mxu0 %v258_v0 }
  0x1c   :  { %239 = vmatpush3.msra.mxu0 %v17_v14 }
  0x1d   :  { %240 = vmatprep.subr.mxu0 %v258_v0 }
  0x1e   :  { %241 = vmatpush3.msra.mxu0 %v16_v15 }
  0x1f   :  { %242 = vmatprep.subr.mxu0 %v258_v0 }
  0x20   :  { %243 = vmatpush3.msra.mxu0 %v15_v16 }
  0x21   :  { %245 = vmatmul.mubr.f32.vlgmr.msra.gmra.mxu0 %v14_v17 }
  0xe1   :  { %v97_v20 = vpop.f32.mrf.mxu0 }
  0xe2   :  { %v101_v21 = vmul.f32 %v97_v20, %v97_v20 }
  0xe3   :  { %v246_v22 = vpop.f32.mrf.mxu0 }
  0xe4   :  { %252 = vmatmul.mubr.msk.f32.vlgmr.msra.gmra.mxu1 %vm104_vm1, %v101_v21 }
 0x1a4   :  { %v174_v23 = vpop.f32.mrf.mxu1 }
 0x1a5   :  { %256 = vrsqrt.f32 %v174_v23  ;;  %vm180_vm2 = vcmp.eq.f32.partialorder %v174_v23, inf  ;;  %v183_v27 = vand.u32 2147483648, %v174_v23  ;;  %vm182_vm4 = vcmp.eq.f32.partialorder %v174_v23, 0.0 }
 0x1a6   :  { %v253_v24 = vpop.f32.mrf.mxu1 }
 0x1b2   :  { %v257_v25 = vpop.eup %256 }
 0x1b3   :  { %v179_v26 = vmul.f32 %v257_v25, %v174_v23 }
 0x1b5   :  { %v181_v28 = vsel %vm180_vm2, %v174_v23, %v179_v26 }
 0x1b6   :  { %v184_v29 = vsel %vm182_vm4, %v183_v27, %v181_v28 }
 0x1b7   :  { %186 = vst.msk [vmem:[%s343_s3] sm:$0xff] %vm185_vm3, %v184_v29 }

</bundles_post_ra>
